<compile_context>
chip_gen: v5e
topology: v5e:2x2
jax: 0.10.0
libtpu: 0.0.40
codegen_flags: <defaults>
</compile_context>

<pallas_src>
import functools

import jax
import jax.numpy as jnp
from jax import lax
from jax.experimental import pallas as pl
from jax.experimental.pallas import tpu as pltpu


def _round_up(x, m):
    return ((x + m - 1) // m) * m


def _vmem_capacity_bytes():
    """Physical VMEM per core; fall back to the smallest (v7x, 64 MiB)."""
    try:
        return int(pltpu.get_tpu_info().vmem_capacity_bytes)
    except Exception:
        return 64 << 20


def _style_loss_kernel(feat_ref, tgt_ref, g_ref, loss_ref, *,
                       inv_norm, inv_mse, k_total, tk, needs_mask):
    """Grid: (ceil(K / tk),) sequential reduction over the spatial axis.

    feat_ref : (M, tk) VMEM tile of the features matrix (native dtype)
    tgt_ref  : (M, M)  f32 target Gram matrix (resident, constant index)
    g_ref    : (M, M)  f32 output Gram matrix, used directly as accumulator
    loss_ref : (1, 1)  f32 output scalar MSE loss
    """
    k = pl.program_id(0)

    f = feat_ref[...]
    if needs_mask:
        # Ragged last tile: lanes >= (k_total - k*tk) are out-of-bounds
        # padding (garbage) from the boundary DMA; zero them before the dot
        # (zero columns do not change F @ F^T).  On non-last tiles the mask
        # is all-true -- a handful of VPU ops, negligible vs. the matmul.
        col = lax.broadcasted_iota(jnp.int32, f.shape, 1)
        f = jnp.where(col < (k_total - k * tk), f, jnp.zeros_like(f))

    # G_partial = F_k . F_k^T: contract the tile axis of f with itself, so no
    # explicit (M, tk) -> (tk, M) transpose per grid step; the MXU
    # accumulates in f32 regardless of the streaming dtype.
    partial = lax.dot_general(
        f, f,
        dimension_numbers=(((1,), (1,)), ((), ())),
        preferred_element_type=jnp.float32,
    )

    @pl.when(k == 0)
    def _():
        g_ref[...] = partial          # direct write: skip zero-init + RMW pass

    @pl.when(k > 0)
    def _():
        g_ref[...] += partial

    @pl.when(k == pl.num_programs(0) - 1)
    def _():
        g = g_ref[...] * inv_norm                 # divide by a*b*c*d
        g_ref[...] = g
        diff = g - tgt_ref[...]
        loss_ref[...] = (jnp.sum(diff * diff, axis=(0, 1), keepdims=True)
                         * inv_mse).astype(loss_ref.dtype)


def _gram_and_mse(features, target_gram, norm_elems, max_tile_lanes=None):
    """features: (M, K) f32/bf16; target_gram: (M, M) f32.
    Returns (G (M,M) f32, loss (1,1) f32) where loss = mean((G - target)^2).

    max_tile_lanes: optional cap on the K tile width (testing hook to force
    the multi-tile / ragged-tail path at small shapes).
    """
    M, K = features.shape
    feat_bytes = features.dtype.itemsize

    # --- per-generation VMEM budgeting ------------------------------------
    vmem_cap = _vmem_capacity_bytes()               # 64 MiB v7x, 128 MiB v5e/v6e
    budget = min(vmem_cap - (16 << 20), 100 << 20)  # ~48 MiB v7x, 100 MiB v5e/v6e

    # Constant-index resident M x M f32 blocks never change -> single-buffer
    # them once they are big enough to matter, freeing VMEM for a larger tk.
    gram_bytes = M * M * 4
    single_buffer_gram = gram_bytes >= (1 << 20)
    gram_bufs = 1 if single_buffer_gram else 2
    resident = 2 * gram_bufs * gram_bytes           # target + G

    tile_budget = max(budget - resident, 2 * M * 128 * feat_bytes)
    tk_fit = max(128, (tile_budget // (2 * M * feat_bytes)) // 128 * 128)
    if max_tile_lanes is not None:
        tk_fit = max(128, min(tk_fit, (max_tile_lanes // 128) * 128))

    K_up = _round_up(K, 128)
    if tk_fit >= K_up and max_tile_lanes is None:
        # Whole reduction fits in one block: use the exact width (a
        # full-extent block is always layout-legal), no masking needed.
        tk, needs_mask = K, False
    else:
        tk, needs_mask = int(tk_fit), (K % int(tk_fit)) != 0
    grid = (pl.cdiv(K, tk),)

    used = resident + 2 * M * tk * feat_bytes + 4096   # + tiny loss buffers
    vmem_limit = int(min(max(used + (8 << 20), 32 << 20), vmem_cap - (8 << 20)))

    kernel = functools.partial(
        _style_loss_kernel,
        inv_norm=1.0 / float(norm_elems),
        inv_mse=1.0 / float(M * M),
        k_total=K, tk=tk, needs_mask=needs_mask,
    )

    gram_kwargs = (dict(pipeline_mode=pl.Buffered(1))
                   if single_buffer_gram else {})

    g, loss = pl.pallas_call(
        kernel,
        out_shape=(
            jax.ShapeDtypeStruct((M, M), jnp.float32),
            jax.ShapeDtypeStruct((1, 1), jnp.float32),
        ),
        grid_spec=pltpu.PrefetchScalarGridSpec(
            num_scalar_prefetch=0,
            grid=grid,
            in_specs=[
                pl.BlockSpec((M, tk), lambda k: (0, k)),
                pl.BlockSpec((M, M), lambda k: (0, 0), **gram_kwargs),
            ],
            out_specs=[
                pl.BlockSpec((M, M), lambda k: (0, 0), **gram_kwargs),
                pl.BlockSpec((1, 1), lambda k: (0, 0)),
            ],
        ),
        compiler_params=pltpu.CompilerParams(
            dimension_semantics=("arbitrary",),
            vmem_limit_bytes=vmem_limit,
        ),
    )(features, target_gram)
    return g, loss


def _feature_matrix(x, stream_bf16=False):
    """Reshape NCHW feature map to (M, K) = (a*b, c*d); pick streaming dtype."""
    a, b, c, d = x.shape
    f = x.reshape(a * b, c * d)
    if f.dtype not in (jnp.bfloat16, jnp.float32):
        f = f.astype(jnp.float32)
    if stream_bf16 and f.dtype == jnp.float32:
        # Optional accuracy/bandwidth tradeoff: halves HBM traffic (kernel is
        # HBM-bound for typical M on v6e/v5e) and restores full MXU rate on
        # v5e; accumulation stays f32 inside the kernel.
        f = f.astype(jnp.bfloat16)
    return f, a * b * c * d


def gram_matrix(x):
    """Pallas equivalent of the PyTorch gram_matrix helper. x: (a,b,c,d)."""
    features, norm = _feature_matrix(x)
    M = features.shape[0]
    zero_tgt = jnp.zeros((M, M), jnp.float32)
    g, _ = _gram_and_mse(features, zero_tgt, norm)
    return g


class StyleLoss:
    """JAX/Pallas port of the PyTorch StyleLoss module.

    __init__ captures the target Gram matrix; forward(input) computes the
    Gram matrix of `input`, stores the MSE loss vs. the target, and returns
    `input` unchanged (same as the PyTorch module).
    """

    def __init__(self, target_feature, stream_bf16=False):
        self.stream_bf16 = stream_bf16
        self.target = gram_matrix(target_feature)   # detached by construction
        self.loss = jnp.float32(0.0)                # mse(target, target) == 0

    def forward(self, x):
        features, norm = _feature_matrix(x, self.stream_bf16)
        _, loss = _gram_and_mse(features, self.target, norm)
        self.loss = loss[0, 0]
        return x

    __call__ = forward


if __name__ == "__main__":
    key = jax.random.PRNGKey(0)
    k_tgt, k_in, k_tgt2, k_in2 = jax.random.split(key, 4)

    # Reference in plain JAX.
    def gram_ref(t):
        aa, bb, cc, dd = t.shape
        f = t.reshape(aa * bb, cc * dd)
        return (f @ f.T) / (aa * bb * cc * dd)

    # --- Test 1: the module at small NCHW shapes (single-tile path) -------
    a, b, c, d = 2, 4, 16, 16
    target_feature = jax.random.normal(k_tgt, (a, b, c, d), dtype=jnp.float32)
    x = jax.random.normal(k_in, (a, b, c, d), dtype=jnp.float32)

    module = StyleLoss(target_feature)
    out = module(x)
    out = jax.block_until_ready(out)
    loss = jax.block_until_ready(module.loss)

    g_ref_tgt = gram_ref(target_feature)
    g_ref_in = gram_ref(x)
    loss_ref = jnp.mean((g_ref_in - g_ref_tgt) ** 2)

    assert out.shape == x.shape
    assert jnp.allclose(out, x)
    assert jnp.allclose(module.target, g_ref_tgt, rtol=1e-5, atol=1e-5)
    assert jnp.allclose(loss, loss_ref, rtol=1e-5, atol=1e-6)

    # --- Test 2: ragged K (K=200, forced tk=128) exercises the in-kernel
    #     tail masking + multi-step accumulation + fused MSE path ----------
    a2, b2, c2, d2 = 2, 4, 10, 20
    target_feature2 = jax.random.normal(k_tgt2, (a2, b2, c2, d2), jnp.float32)
    x2 = jax.random.normal(k_in2, (a2, b2, c2, d2), jnp.float32)

    tgt2 = gram_ref(target_feature2).astype(jnp.float32)
    feats2, norm2 = _feature_matrix(x2)
    g2, loss2 = _gram_and_mse(feats2, tgt2, norm2, max_tile_lanes=128)
    g2 = jax.block_until_ready(g2)
    loss2 = jax.block_until_ready(loss2)

    g2_ref = gram_ref(x2)
    loss2_ref = jnp.mean((g2_ref - tgt2) ** 2)
    assert jnp.allclose(g2, g2_ref, rtol=1e-5, atol=1e-5)
    assert jnp.allclose(loss2[0, 0], loss2_ref, rtol=1e-5, atol=1e-6)

    print("KERNEL_OK")
</pallas_src>

<mosaic_0001>
module attributes {stable_mosaic.version = 11 : i64} {
  func.func @_style_loss_kernel(%arg0: i32, %arg1: memref<8x256xf32, #tpu.memory_space<vmem>>, %arg2: memref<8x8xf32, #tpu.memory_space<vmem>>, %arg3: memref<8x8xf32, #tpu.memory_space<vmem>>, %arg4: memref<1x1xf32, #tpu.memory_space<vmem>>) attributes {dimension_semantics = [#tpu.dimension_semantics<arbitrary>], iteration_bounds = array<i64: 1>, scalar_prefetch = 0 : i64, scratch_operands = 0 : i64, tpu.core_type = #tpu.core_type<tc>, window_params = [{transform_indices = @transform_0, window_bounds = array<i64: 8, 256>}, {pipeline_mode = #tpu.pipeline_mode<synchronous>, transform_indices = @transform_1, window_bounds = array<i64: 8, 8>}, {pipeline_mode = #tpu.pipeline_mode<synchronous>, transform_indices = @transform_2, window_bounds = array<i64: 8, 8>}, {pipeline_mode = #tpu.pipeline_mode<synchronous>, transform_indices = @transform_3, window_bounds = array<i64: 1, 1>}]} {
    %c0 = arith.constant 0 : index
    %c0_0 = arith.constant 0 : index
    %0 = vector.load %arg1[%c0, %c0_0] : memref<8x256xf32, #tpu.memory_space<vmem>>, vector<8x256xf32>
    %cst = arith.constant dense<0.000000e+00> : vector<8x8xf32>
    %1 = tpu.matmul %0, %0, %cst {dimension_numbers = #tpu.dot_dimension_numbers<[1], [1], [0], [0], [0, 0, 1, 0], [], []>} : vector<8x256xf32>, vector<8x256xf32>, vector<8x8xf32> -> vector<8x8xf32>
    %c0_i32 = arith.constant 0 : i32
    %2 = arith.cmpi eq, %arg0, %c0_i32 : i32
    %3 = arith.extui %2 : i1 to i32
    %c0_i32_1 = arith.constant 0 : i32
    %4 = arith.cmpi ne, %3, %c0_i32_1 : i32
    scf.if %4 {
      %c0_6 = arith.constant 0 : index
      %c0_7 = arith.constant 0 : index
      %11 = vector.load %arg3[%c0_6, %c0_7] : memref<8x8xf32, #tpu.memory_space<vmem>>, vector<8x8xf32>
      tpu.vector_store %arg3[%c0_6, %c0_7], %1 {strides = array<i32>} : memref<8x8xf32, #tpu.memory_space<vmem>>, vector<8x8xf32>,
    } else {
    }
    %c0_i32_2 = arith.constant 0 : i32
    %5 = arith.cmpi sgt, %arg0, %c0_i32_2 : i32
    %6 = arith.extui %5 : i1 to i32
    %c0_i32_3 = arith.constant 0 : i32
    %7 = arith.cmpi ne, %6, %c0_i32_3 : i32
    scf.if %7 {
      %c0_6 = arith.constant 0 : index
      %c0_7 = arith.constant 0 : index
      %11 = vector.load %arg3[%c0_6, %c0_7] : memref<8x8xf32, #tpu.memory_space<vmem>>, vector<8x8xf32>
      %12 = arith.addf %11, %1 : vector<8x8xf32>
      %c0_8 = arith.constant 0 : index
      %c0_9 = arith.constant 0 : index
      %13 = vector.load %arg3[%c0_8, %c0_9] : memref<8x8xf32, #tpu.memory_space<vmem>>, vector<8x8xf32>
      tpu.vector_store %arg3[%c0_8, %c0_9], %12 {strides = array<i32>} : memref<8x8xf32, #tpu.memory_space<vmem>>, vector<8x8xf32>,
    } else {
    }
    %c0_i32_4 = arith.constant 0 : i32
    %8 = arith.cmpi eq, %arg0, %c0_i32_4 : i32
    %9 = arith.extui %8 : i1 to i32
    %c0_i32_5 = arith.constant 0 : i32
    %10 = arith.cmpi ne, %9, %c0_i32_5 : i32
    scf.if %10 {
      %c0_6 = arith.constant 0 : index
      %c0_7 = arith.constant 0 : index
      %11 = vector.load %arg3[%c0_6, %c0_7] : memref<8x8xf32, #tpu.memory_space<vmem>>, vector<8x8xf32>
      %cst_8 = arith.constant 4.8828125E-4 : f32
      %12 = vector.broadcast %cst_8 : f32 to vector<8x8xf32>
      %13 = arith.mulf %11, %12 : vector<8x8xf32>
      %c0_9 = arith.constant 0 : index
      %c0_10 = arith.constant 0 : index
      %14 = vector.load %arg3[%c0_9, %c0_10] : memref<8x8xf32, #tpu.memory_space<vmem>>, vector<8x8xf32>
      tpu.vector_store %arg3[%c0_9, %c0_10], %13 {strides = array<i32>} : memref<8x8xf32, #tpu.memory_space<vmem>>, vector<8x8xf32>,
      %c0_11 = arith.constant 0 : index
      %c0_12 = arith.constant 0 : index
      %15 = vector.load %arg2[%c0_11, %c0_12] : memref<8x8xf32, #tpu.memory_space<vmem>>, vector<8x8xf32>
      %16 = arith.subf %13, %15 : vector<8x8xf32>
      %17 = arith.mulf %16, %16 : vector<8x8xf32>
      %18 = vector.shape_cast %17 : vector<8x8xf32> to vector<1x8x8xf32>
      %cst_13 = arith.constant dense<0.000000e+00> : vector<1xf32>
      %19 = vector.multi_reduction <add>, %18, %cst_13 [1, 2] : vector<1x8x8xf32> to vector<1xf32>
      %20 = vector.shape_cast %19 : vector<1xf32> to vector<1x1x1xf32>
      %21 = vector.extract %20[0, 0, 0] : f32 from vector<1x1x1xf32>
      %22 = vector.broadcast %21 : f32 to vector<1x1xf32>
      %cst_14 = arith.constant 1.562500e-02 : f32
      %23 = vector.broadcast %cst_14 : f32 to vector<1x1xf32>
      %24 = arith.mulf %22, %23 : vector<1x1xf32>
      %c0_15 = arith.constant 0 : index
      %c0_16 = arith.constant 0 : index
      %25 = vector.load %arg4[%c0_15, %c0_16] : memref<1x1xf32, #tpu.memory_space<vmem>>, vector<1x1xf32>
      tpu.vector_store %arg4[%c0_15, %c0_16], %24 {strides = array<i32>} : memref<1x1xf32, #tpu.memory_space<vmem>>, vector<1x1xf32>,
    } else {
    }
    return
  }
  func.func @transform_0(%arg0: i32) -> (i32, i32) {
    %c0_i32 = arith.constant 0 : i32
    %c0_i32_0 = arith.constant 0 : i32
    return %c0_i32, %arg0 : i32, i32
  }
  func.func @transform_1(%arg0: i32) -> (i32, i32) {
    %c0_i32 = arith.constant 0 : i32
    %c0_i32_0 = arith.constant 0 : i32
    %c0_i32_1 = arith.constant 0 : i32
    return %c0_i32, %c0_i32_0 : i32, i32
  }
  func.func @transform_2(%arg0: i32) -> (i32, i32) {
    %c0_i32 = arith.constant 0 : i32
    %c0_i32_0 = arith.constant 0 : i32
    %c0_i32_1 = arith.constant 0 : i32
    return %c0_i32, %c0_i32_0 : i32, i32
  }
  func.func @transform_3(%arg0: i32) -> (i32, i32) {
    %c0_i32 = arith.constant 0 : i32
    %c0_i32_0 = arith.constant 0 : i32
    %c0_i32_1 = arith.constant 0 : i32
    return %c0_i32, %c0_i32_0 : i32, i32
  }
}

</mosaic_0001>

<bundles_post_ra>
// kernel: tpu_custom_call.1
= control target key start
LH: loop header
LB: loop body
LE: loop exit
PB: predicated region body
PF: predicated region fallthrough
CT: control target
= control target key end

     0   :  { %9 = vsyncpa [#allocation3], 0  ;;  %s303_s0 = inlined_call_operand.hbm [shape: f32[8,256], index: 0, kind: input, shape index: {}]   ;;  %s304_s1 = inlined_call_operand.hbm [shape: f32[8,8], index: 1, kind: input, shape index: {}]   ;;  %s305_s2 = inlined_call_operand.hbm [shape: f32[8,8], index: 2, kind: output, shape index: {0}]   ;;  %s306_s3 = inlined_call_operand.hbm [shape: f32[1,1], index: 3, kind: output, shape index: {1}]  }
   0x1   :  { %10 = vsyncpa [#allocation6], 0 }
   0x2   :  { %11 = vsyncpa [#allocation4], 0 }
   0x3   :  { %12 = vsyncpa [#allocation9], 0  ;;  %s18_s14 = sshll.u32 %s303_s0, 4  ;;  %s267_s15 = smov [#allocation2]   ;;  %s19_s14 = int_to_ptr.hbm [resolvable:$true] %s18_s14 }
   0x4   :  { %s20_s16 = sshll.u32 %s267_s15, 4  ;;  %s29_s19 = sshll.u32 %s304_s1, 4  ;;  %s21_s16 = int_to_ptr.vmem [resolvable:$true] %s20_s16  ;;  %s30_s19 = int_to_ptr.hbm [resolvable:$true] %s29_s19 }
   0x5   :  { %23 = dma.hbm_to_vmem [thread:$0]  %s19_s14, 256, %s21_s16, [#allocation3]  }
   0x6   :  { %s268_s20 = smov [#allocation5]  }
   0x7   :  { %s31_s21 = sshll.u32 %s268_s20, 4  ;;  %s32_s21 = int_to_ptr.vmem [resolvable:$true] %s31_s21 }
   0x8   :  { %34 = dma.hbm_to_vmem [thread:$0]  %s30_s19, 128, %s32_s21, [#allocation6]  }
   0x9   :  { %259 = dma.done.wait [#allocation3], 256  }
   0xa   :  { %260 = vsyncadd [#allocation3], 4294967040 }
   0xb   :  { %261 = dma.done.wait [#allocation6], 128  }
   0xc   :  { %262 = vsyncadd [#allocation6], 4294967168  ;;  %v43_v0 = vld [vmem:[#allocation2] sm:$0xff]  ;;  %v44_v1 = vld [vmem:[#allocation2 + $0x8] sm:$0xff]  ;;  %vm89_vm0 = vcmask 64512   ;;  %s130_s22 = sshll.u32 %s305_s2, 4  ;;  %s131_s22 = int_to_ptr.hbm [resolvable:$true] %s130_s22 }
   0xd   :  { %60 = vmatpush.xpose.msra.mxu0 %v43_v0  ;;  %80 = vmatpush.xpose.msra.mxu1 %v44_v1  ;;  %v106_v6 = vld [vmem:[#allocation5] sm:$0xff]  ;;  %s269_s23 = smov [#allocation7]   ;;  %s270_s25 = smov [#allocation8]   ;;  %vm121_vm1 = vcmask 0  }
   0xe   :  { %s128_s24 = sshll.u32 %s269_s23, 4  ;;  %s139_s26 = sshll.u32 %s270_s25, 4  ;;  %s129_s24 = int_to_ptr.vmem [resolvable:$true] %s128_s24  ;;  %s140_s26 = int_to_ptr.vmem [resolvable:$true] %s139_s26 }
   0xf   :  { %s141_s29 = sshll.u32 %s306_s3, 4  ;;  %s142_s29 = int_to_ptr.hbm [resolvable:$true] %s141_s29 }
  0x10   :  { %61 = vmatmul.f32.vlgmr.msra.gmra.mxu0 %v43_v0  ;;  %81 = vmatmul.f32.vlgmr.msra.gmra.mxu1 %v44_v1 }
  0x8d   :  { %v62_v2 = vpop.f32.mrf.mxu0  ;;  %v82_v3 = vpop.f32.mrf.mxu1 }
  0x8e   :  { %v83_v4 = vadd.f32 %v82_v3, %v62_v2 }
  0x90   :  { %90 = vst.msk [vmem:[#allocation7] sm:$0xff] %vm89_vm0, %v83_v4 }
  0x97   :  { %v102_v5 = vld [vmem:[#allocation7] sm:$0xff] }
  0x98   :  { %v103_v7 = vmul.f32 0.00048828125, %v102_v5 }
  0x9a   :  { %v107_v8 = vsub.f32 %v103_v7, %v106_v6  ;;  %105 = vst.msk [vmem:[#allocation7] sm:$0xff] %vm89_vm0, %v103_v7 }
  0x9b   :  { %133 = dma.vmem_to_hbm [thread:$0]  %s129_s24, 128, %s131_s22, [#allocation4]  }
  0x9c   :  { %v108_v9 = vmul.f32 %v107_v8, %v107_v8 }
  0x9e   :  { %v109_v10 = vsel %vm89_vm0, %v108_v9, 0.0 }
  0x9f   :  { %110 = vadd.xlane.f32.xlu0 %v109_v10 }
 0x112   :  { %v111_v11 = vpop.xlane.xlu0 %110 }
 0x113   :  { %v112_v12 = vrot.slane %v111_v11, 4 }
 0x115   :  { %v113_v13 = vadd.f32 %v112_v12, %v111_v11 }
 0x117   :  { %v114_v14 = vrot.slane %v113_v13, 2 }
 0x119   :  { %v115_v15 = vadd.f32 %v114_v14, %v113_v13 }
 0x11b   :  { %v116_v16 = vrot.slane %v115_v15, 1 }
 0x11d   :  { %v117_v17 = vadd.f32 %v116_v16, %v115_v15 }
 0x11f   :  { %157 = vpush %v117_v17 }
 0x150   :  { %s158_s2 = spop %157 }
 0x151   :  { %v119_v18 = vstv %s158_s2 }
 0x152   :  { %v120_v19 = vmul.f32 0.015625, %v119_v18 }
 0x154   :  { %122 = vst.msk [vmem:[#allocation8] sm:$0x1] %vm121_vm1, %v120_v19 }
 0x155   :  { %144 = dma.vmem_to_hbm [thread:$0]  %s140_s26, 16, %s142_s29, [#allocation9]  }
 0x156   :  { %263 = dma.done.wait [#allocation4], 128  }
 0x157   :  { %264 = vsyncadd [#allocation4], 4294967168 }
 0x158   :  { %265 = dma.done.wait [#allocation9], 16  }
 0x159   :  { %266 = vsyncadd [#allocation9], 4294967280 }
 0x15a   :  { %153 = vsyncpa [#allocation3], 1 }
 0x15b   :  { %154 = vsyncpa [#allocation6], 1 }
 0x15c   :  { %155 = vsyncpa [#allocation4], 1 }
 0x15d   :  { %156 = vsyncpa [#allocation9], 1 }

</bundles_post_ra>
